<compile_context>
chip_gen: v6e
topology: v6e:2x2x1
jax: 0.10.0
libtpu: 0.0.40
codegen_flags: <defaults>
</compile_context>

<pallas_src>
import math
import functools

import jax
import jax.numpy as jnp
from jax.experimental import pallas as pl
from jax.experimental.pallas import tpu as pltpu


def _round_up(n: int, m: int) -> int:
    return ((n + m - 1) // m) * m


def _sinusoidal_kernel(x_ref, w_ref, phase_ref, o_ref, *, scale: float, groups: int):
    # x_ref:     (TR, G)  G packed scalar positions per packed output row
    # w_ref:     (G, L)   W[g, g*S + j] = freq2[j], 0 elsewhere (S = 2*half, L = G*S)
    # phase_ref: (1, L)   0 on sin lanes, pi/2 on cos lanes  (cos z == sin(z + pi/2))
    # o_ref:     (TR, L)  packed, lane-dense output tile; single full-width store
    x = x_ref[...].astype(jnp.float32) * scale            # (TR, G)
    w = w_ref[...]                                         # (G, L), resident
    arg = x[:, 0:1] * w[0:1, :]                            # (TR, L) via broadcast
    for g in range(1, groups):                             # static tiny loop (G <= 128/S)
        arg = arg + x[:, g:g + 1] * w[g:g + 1, :]          # only one term is nonzero/lane
    out = jnp.sin(arg + phase_ref[...])                    # sin + phase covers cos lanes
    o_ref[...] = out.astype(o_ref.dtype)


def sinusoidal_embedding(x, input_size: int, *, scale: float = 1.0,
                         out_dtype=jnp.float32, tile_budget_bytes: int = 8 << 20):
    """x: any shape of scalar positions (flattened). Returns (rows, 2*(input_size//2))."""
    half = input_size // 2
    assert half >= 2, "input_size must be >= 4"
    size = 2 * half

    # Frequency buffer, identical to the PyTorch nn.Parameter (requires_grad=False).
    k = math.log(10000.0) / (half - 1)
    freq = jnp.exp(-k * jnp.arange(half, dtype=jnp.float32))           # (half,)
    freq2 = jnp.concatenate([freq, freq])                              # (size,)
    phase_row = jnp.concatenate([jnp.zeros((half,), jnp.float32),
                                 jnp.full((half,), math.pi / 2, jnp.float32)])

    xf = jnp.asarray(x).reshape(-1).astype(jnp.float32)
    rows = xf.shape[0]

    # Lane-dense packing factor (biggest lever for small embedding widths).
    G = 1
    if size < 128 and 128 % size == 0 and rows % (128 // size) == 0:
        G = 128 // size
    L = G * size
    n_prows = rows // G                                                # packed rows

    # Block-diagonal frequency table and repeated phase row (resident constants).
    eye = jnp.eye(G, dtype=jnp.float32)
    w = (eye[:, :, None] * freq2[None, None, :]).reshape(G, L)         # (G, L)
    phase = jnp.tile(phase_row, (G,)).reshape(1, L)                    # (1, L)

    x2 = xf.reshape(n_prows, G)

    # Rows-per-tile from a byte budget, honest about (8,128) lane padding of
    # both the output row and the (narrow) x row.  Ensure >= 2 grid steps when
    # possible so "parallel" can shard tiles across the 2 TensorCores on v7x.
    lpad = _round_up(L, 128)
    padded_row_bytes = (lpad + 128) * 4
    tr = max(8, (tile_budget_bytes // padded_row_bytes) // 8 * 8)
    if n_prows >= 16:
        tr = min(tr, _round_up(-(-n_prows // 2), 8))
    if tr >= n_prows:
        tr = n_prows                                  # single full-extent block (tiny input)
    grid = (pl.cdiv(n_prows, tr),)                    # ragged last block: writes clipped

    # VMEM: double-buffered x/out tiles + resident tables, with (8,128) padding.
    tr_pad = _round_up(tr, 8)
    vmem_bytes = (2 * tr_pad * lpad * 4               # output tiles
                  + 2 * tr_pad * 128 * 4              # x tiles (lane-padded)
                  + 4 * _round_up(G, 8) * lpad * 4)   # W + phase
    vmem_limit = int(min(max(vmem_bytes + (2 << 20), 4 << 20), 32 << 20))

    out_itemsize = jnp.dtype(out_dtype).itemsize
    cost = pl.CostEstimate(
        flops=int(n_prows * (2 * G + 1) * L),         # scale mul + G mul/add per lane
        transcendentals=int(n_prows * L),             # one sin per output element
        bytes_accessed=int(rows * 4 + 2 * G * L * 4 + n_prows * L * out_itemsize),
    )

    out = pl.pallas_call(
        functools.partial(_sinusoidal_kernel, scale=float(scale), groups=G),
        out_shape=jax.ShapeDtypeStruct((n_prows, L), out_dtype),
        grid_spec=pltpu.PrefetchScalarGridSpec(
            num_scalar_prefetch=0,
            grid=grid,
            in_specs=[
                pl.BlockSpec((tr, G), lambda i: (i, 0)),   # packed x rows
                pl.BlockSpec((G, L), lambda i: (0, 0)),    # W (resident)
                pl.BlockSpec((1, L), lambda i: (0, 0)),    # phase (resident)
            ],
            out_specs=pl.BlockSpec((tr, L), lambda i: (i, 0)),
        ),
        compiler_params=pltpu.CompilerParams(
            dimension_semantics=("parallel",),             # row tiles shard across TCs
            vmem_limit_bytes=vmem_limit,
        ),
        cost_estimate=cost,
    )(x2, w, phase)

    # Free row-major reshape back to the module's (rows, size) layout.
    return out.reshape(rows, size)


def sinusoidal_embedding_ref(x, input_size: int, scale: float = 1.0):
    """Pure-JAX reference matching the PyTorch module."""
    half = input_size // 2
    k = math.log(10000.0) / (half - 1)
    freq = jnp.exp(-k * jnp.arange(half, dtype=jnp.float32))
    xs = jnp.asarray(x).reshape(-1, 1).astype(jnp.float32) * scale
    arg = xs * freq[None, :]
    return jnp.concatenate([jnp.sin(arg), jnp.cos(arg)], axis=-1)


if __name__ == "__main__":
    key = jax.random.PRNGKey(0)
    ROWS = 16                                   # e.g. batch=2 x seq=8 positions/timesteps
    x = jax.random.uniform(key, (ROWS,), dtype=jnp.float32) * 16.0

    # 1) Packed lane-dense path: input_size=32 -> 4 rows per 128-lane output row.
    out = jax.block_until_ready(sinusoidal_embedding(x, 32, scale=1.0))
    ref = sinusoidal_embedding_ref(x, 32, scale=1.0)
    assert out.shape == (ROWS, 32), out.shape
    assert jnp.allclose(out, ref, atol=2e-5, rtol=2e-5), "packed path mismatch"

    # 2) Wide, already lane-aligned path: input_size=256 (>=128, no packing).
    out2 = jax.block_until_ready(sinusoidal_embedding(x, 256, scale=2.0))
    ref2 = sinusoidal_embedding_ref(x, 256, scale=2.0)
    assert out2.shape == (ROWS, 256), out2.shape
    assert jnp.allclose(out2, ref2, atol=2e-5, rtol=2e-5), "wide path mismatch"

    # 3) Row count not divisible by the packing factor -> unpacked fallback.
    x3 = x[:10]
    out3 = jax.block_until_ready(sinusoidal_embedding(x3, 32, scale=1.0))
    ref3 = sinusoidal_embedding_ref(x3, 32, scale=1.0)
    assert out3.shape == (10, 32), out3.shape
    assert jnp.allclose(out3, ref3, atol=2e-5, rtol=2e-5), "fallback path mismatch"

    print("KERNEL_OK")
</pallas_src>

<mosaic_0001>
module attributes {stable_mosaic.version = 11 : i64} {
  func.func @_sinusoidal_kernel(%arg0: i32, %arg1: memref<4x4xf32, #tpu.memory_space<vmem>>, %arg2: memref<4x128xf32, #tpu.memory_space<vmem>>, %arg3: memref<1x128xf32, #tpu.memory_space<vmem>>, %arg4: memref<4x128xf32, #tpu.memory_space<vmem>>) attributes {dimension_semantics = [#tpu.dimension_semantics<parallel>], iteration_bounds = array<i64: 1>, scalar_prefetch = 0 : i64, scratch_operands = 0 : i64, tpu.core_type = #tpu.core_type<tc>, window_params = [{transform_indices = @transform_0, window_bounds = array<i64: 4, 4>}, {pipeline_mode = #tpu.pipeline_mode<synchronous>, transform_indices = @transform_1, window_bounds = array<i64: 4, 128>}, {pipeline_mode = #tpu.pipeline_mode<synchronous>, transform_indices = @transform_2, window_bounds = array<i64: 1, 128>}, {transform_indices = @transform_3, window_bounds = array<i64: 4, 128>}]} {
    %c0 = arith.constant 0 : index
    %c0_0 = arith.constant 0 : index
    %0 = vector.load %arg1[%c0, %c0_0] : memref<4x4xf32, #tpu.memory_space<vmem>>, vector<4x4xf32>
    %cst = arith.constant 1.000000e+00 : f32
    %1 = vector.broadcast %cst : f32 to vector<4x4xf32>
    %2 = arith.mulf %0, %1 : vector<4x4xf32>
    %c0_1 = arith.constant 0 : index
    %c0_2 = arith.constant 0 : index
    %3 = vector.load %arg2[%c0_1, %c0_2] : memref<4x128xf32, #tpu.memory_space<vmem>>, vector<4x128xf32>
    %4 = vector.extract_strided_slice %2 {offsets = [0, 0], sizes = [4, 1], strides = [1, 1]} : vector<4x4xf32> to vector<4x1xf32>
    %5 = vector.extract_strided_slice %3 {offsets = [0, 0], sizes = [1, 128], strides = [1, 1]} : vector<4x128xf32> to vector<1x128xf32>
    %6 = vector.broadcast %4 : vector<4x1xf32> to vector<4x128xf32>
    %7 = vector.broadcast %5 : vector<1x128xf32> to vector<4x128xf32>
    %8 = arith.mulf %6, %7 : vector<4x128xf32>
    %9 = vector.extract_strided_slice %2 {offsets = [0, 1], sizes = [4, 1], strides = [1, 1]} : vector<4x4xf32> to vector<4x1xf32>
    %10 = vector.extract_strided_slice %3 {offsets = [1, 0], sizes = [1, 128], strides = [1, 1]} : vector<4x128xf32> to vector<1x128xf32>
    %11 = vector.broadcast %9 : vector<4x1xf32> to vector<4x128xf32>
    %12 = vector.broadcast %10 : vector<1x128xf32> to vector<4x128xf32>
    %13 = arith.mulf %11, %12 : vector<4x128xf32>
    %14 = arith.addf %8, %13 : vector<4x128xf32>
    %15 = vector.extract_strided_slice %2 {offsets = [0, 2], sizes = [4, 1], strides = [1, 1]} : vector<4x4xf32> to vector<4x1xf32>
    %16 = vector.extract_strided_slice %3 {offsets = [2, 0], sizes = [1, 128], strides = [1, 1]} : vector<4x128xf32> to vector<1x128xf32>
    %17 = vector.broadcast %15 : vector<4x1xf32> to vector<4x128xf32>
    %18 = vector.broadcast %16 : vector<1x128xf32> to vector<4x128xf32>
    %19 = arith.mulf %17, %18 : vector<4x128xf32>
    %20 = arith.addf %14, %19 : vector<4x128xf32>
    %21 = vector.extract_strided_slice %2 {offsets = [0, 3], sizes = [4, 1], strides = [1, 1]} : vector<4x4xf32> to vector<4x1xf32>
    %22 = vector.extract_strided_slice %3 {offsets = [3, 0], sizes = [1, 128], strides = [1, 1]} : vector<4x128xf32> to vector<1x128xf32>
    %23 = vector.broadcast %21 : vector<4x1xf32> to vector<4x128xf32>
    %24 = vector.broadcast %22 : vector<1x128xf32> to vector<4x128xf32>
    %25 = arith.mulf %23, %24 : vector<4x128xf32>
    %26 = arith.addf %20, %25 : vector<4x128xf32>
    %c0_3 = arith.constant 0 : index
    %c0_4 = arith.constant 0 : index
    %27 = vector.load %arg3[%c0_3, %c0_4] : memref<1x128xf32, #tpu.memory_space<vmem>>, vector<1x128xf32>
    %28 = vector.broadcast %27 : vector<1x128xf32> to vector<4x128xf32>
    %29 = arith.addf %26, %28 : vector<4x128xf32>
    %30 = math.sin %29 : vector<4x128xf32>
    %c0_5 = arith.constant 0 : index
    %c0_6 = arith.constant 0 : index
    %31 = vector.load %arg4[%c0_5, %c0_6] : memref<4x128xf32, #tpu.memory_space<vmem>>, vector<4x128xf32>
    tpu.vector_store %arg4[%c0_5, %c0_6], %30 {strides = array<i32>} : memref<4x128xf32, #tpu.memory_space<vmem>>, vector<4x128xf32>,
    return
  }
  func.func @transform_0(%arg0: i32) -> (i32, i32) {
    %c0_i32 = arith.constant 0 : i32
    %c0_i32_0 = arith.constant 0 : i32
    return %arg0, %c0_i32 : i32, i32
  }
  func.func @transform_1(%arg0: i32) -> (i32, i32) {
    %c0_i32 = arith.constant 0 : i32
    %c0_i32_0 = arith.constant 0 : i32
    %c0_i32_1 = arith.constant 0 : i32
    return %c0_i32, %c0_i32_0 : i32, i32
  }
  func.func @transform_2(%arg0: i32) -> (i32, i32) {
    %c0_i32 = arith.constant 0 : i32
    %c0_i32_0 = arith.constant 0 : i32
    %c0_i32_1 = arith.constant 0 : i32
    return %c0_i32, %c0_i32_0 : i32, i32
  }
  func.func @transform_3(%arg0: i32) -> (i32, i32) {
    %c0_i32 = arith.constant 0 : i32
    %c0_i32_0 = arith.constant 0 : i32
    return %arg0, %c0_i32 : i32, i32
  }
}

</mosaic_0001>

<bundles_post_ra>
// kernel: tpu_custom_call.1
= control target key start
LH: loop header
LB: loop body
LE: loop exit
PB: predicated region body
PF: predicated region fallthrough
CT: control target
= control target key end

     0   :  { %8 = vsyncpa [#allocation3], 0  ;;  %s373_s0 = inlined_call_operand.hbm [shape: f32[4,4], index: 0, kind: input, shape index: {}]   ;;  %s374_s1 = inlined_call_operand.hbm [shape: f32[4,128], index: 1, kind: input, shape index: {}]   ;;  %s375_s2 = inlined_call_operand.vmem [shape: f32[1,128], index: 2, kind: input, shape index: {}]   ;;  %s376_s3 = inlined_call_operand.hbm [shape: f32[4,128], index: 3, kind: output, shape index: {}]  }
   0x1   :  { %9 = vsyncpa [#allocation6], 0 }
   0x2   :  { %10 = vsyncpa [#allocation4], 0  ;;  %s307_s12 = smov [#allocation2]   ;;  %s308_s14 = smov [#allocation5]  }
   0x3   :  { %s17_s13 = sshll.u32 %s307_s12, 4  ;;  %s27_s15 = sshll.u32 %s308_s14, 4  ;;  %s18_s13 = int_to_ptr.vmem [resolvable:$true] %s17_s13  ;;  %s28_s15 = int_to_ptr.vmem [resolvable:$true] %s27_s15 }
   0x4   :  { %s249_s16 = scalar_lea.vmem %s18_s13, 64  ;;  %p254_p1 = scmp.lt.s32.totalorder %s18_s13, %s18_s13 }
   0x5   :  { %p250_p0 = scmp.ne.s32.totalorder %s18_s13, %s249_s16  ;;  %p255_p2 = scmp.lt.s32.totalorder %s249_s16, %s249_s16 }
   0x7   :  { %p256_p3 = por %p255_p2, %p254_p1 }
   0x9   :  { %p257_p4 = pnand %p256_p3, %p250_p0 }
   0xb   :  { %260 = shalt.err (!%p257_p4)
}
   0xc   :  { %20 = dma.hbm_to_vmem [thread:$0]  %s373_s0, 64, %s18_s13, [#allocation3]  }
   0xd   :  { %s269_s19 = scalar_lea.vmem %s28_s15, 64  ;;  %p274_p6 = scmp.lt.s32.totalorder %s28_s15, %s28_s15 }
   0xe   :  { %p270_p5 = scmp.ne.s32.totalorder %s28_s15, %s269_s19  ;;  %p275_p7 = scmp.lt.s32.totalorder %s269_s19, %s269_s19 }
  0x10   :  { %p276_p8 = por %p275_p7, %p274_p6 }
  0x12   :  { %p277_p9 = pnand %p276_p8, %p270_p5 }
  0x14   :  { %280 = shalt.err (!%p277_p9)
}
  0x15   :  { %30 = dma.hbm_to_vmem [thread:$0]  %s374_s1, 64, %s28_s15, [#allocation6]  }
  0x16   :  { %301 = dma.done.wait [#allocation3], 64  }
  0x17   :  { %302 = vsyncadd [#allocation3], 4294967232 }
  0x18   :  { %303 = dma.done.wait [#allocation6], 64  }
  0x19   :  { %304 = vsyncadd [#allocation6], 4294967232  ;;  %v309_v0 = vmov 0   ;;  %v310_v1 = vmov 2   ;;  %v39_v2 = vld [vmem:[#allocation2] sm:$0xf]  ;;  %v46_v5 = vlaneseq }
  0x1a   :  { %232 = vset.pattern.permute.xlu0 %v309_v0  ;;  %234 = vset.pattern.permute.xlu1 %v310_v1  ;;  %v311_v3 = vmov 1   ;;  %v312_v4 = vmov 3   ;;  %v40_v9 = vld [vmem:[#allocation5] sm:$0xf]  ;;  %v210_v26 = vld [vmem:[%s375_s2] ss:$0 sm:$0xff] }
  0x1b   :  { %43 = vperm.xlu0 %232, %v39_v2   ;;  %62 = vperm.xlu1 %234, %v39_v2   ;;  %v47_v6 = vshrl.u32 %v46_v5, 7  ;;  %v313_v39 = vmov 683565275   ;;  %v314_v41 = vmov 2475754826   ;;  %s319_s2 = smov [#allocation7]  }
  0x1c   :  { %v315_v44 = vmov 2131351028   ;;  %v316_v47 = vmov 2102212464   ;;  %v317_v50 = vmov 920167782  }
  0x1d   :  { %v48_v7 = vsub.s32 0, %v47_v6  ;;  %v57_v8 = vsub.s32 1, %v47_v6  ;;  %v67_v11 = vsub.s32 2, %v47_v6  ;;  %v77_v13 = vsub.s32 3, %v47_v6  ;;  %s200_s22 = sshll.u32 %s319_s2, 4  ;;  %s201_s22 = int_to_ptr.vmem [resolvable:$true] %s200_s22 }
  0x1e   :  { %v318_v53 = vmov 1326507024   ;;  %s281_s23 = scalar_lea.vmem %s201_s22, 64  ;;  %p286_p11 = scmp.lt.s32.totalorder %s201_s22, %s201_s22 }
  0x1f   :  { %233 = vset.pattern.permute.xlu0 %v311_v3  ;;  %235 = vset.pattern.permute.xlu1 %v312_v4  ;;  %v49_v14 = vrot.slane %v40_v9, %v48_v7  ;;  %v58_v15 = vrot.slane %v40_v9, %v57_v8  ;;  %v68_v16 = vrot.slane %v40_v9, %v67_v11  ;;  %p282_p10 = scmp.ne.s32.totalorder %s201_s22, %s281_s23  ;;  %p287_p12 = scmp.lt.s32.totalorder %s281_s23, %s281_s23 }
  0x20   :  { %52 = vperm.xlu0 %233, %v39_v2   ;;  %72 = vperm.xlu1 %235, %v39_v2   ;;  %v78_v17 = vrot.slane %v40_v9, %v77_v13 }
  0x21   :  { %p288_p13 = por %p287_p12, %p286_p11 }
  0x23   :  { %p289_p0 = pnand %p288_p13, %p282_p10 }
  0x24   :  { %236 = vset.pattern.permute.xlu0 %v312_v4 }
  0x96   :  { %v44_v10 = vpop.permute.xlu0 %43  ;;  %v63_v12 = vpop.permute.xlu1 %62 }
  0x97   :  { %v50_v20 = vmul.f32 %v49_v14, %v44_v10  ;;  %v69_v22 = vmul.f32 %v68_v16, %v63_v12 }
  0x9b   :  { %v53_v18 = vpop.permute.xlu0 %52  ;;  %v73_v19 = vpop.permute.xlu1 %72 }
  0x9c   :  { %v59_v21 = vmul.f32 %v58_v15, %v53_v18  ;;  %v79_v24 = vmul.f32 %v78_v17, %v73_v19 }
  0x9e   :  { %v60_v23 = vadd.f32 %v59_v21, %v50_v20 }
  0xa0   :  { %v70_v25 = vadd.f32 %v69_v22, %v60_v23 }
  0xa2   :  { %v80_v27 = vadd.f32 %v79_v24, %v70_v25 }
  0xa4   :  { %v349_v28 = vadd.f32 %v210_v26, %v80_v27 }
  0xa6   :  { %v92_v29 = vand.u32 2139095040, %v349_v28  ;;  %v89_v33 = vand.u32 2147483647, %v349_v28  ;;  %vm91_vm7 = vcmp.lt.s32.totalorder %v349_v28, 0  ;;  %vm181_vm12 = vweird.f32 %v349_v28 }
  0xa8   :  { %v93_v30 = vshrl.u32 %v92_v29, 23  ;;  %v96_v37 = vand.u32 8388607, %v89_v33  ;;  %vm90_vm8 = vcmp.le.f32.partialorder %v89_v33, 0.7853982 }
  0xaa   :  { %v211_v31 = vadd.s32 4294967169, %v93_v30  ;;  %v97_v55 = vor.u32 8388608, %v96_v37 }
  0xac   :  { %v99_v32 = vadd.s32 1, %v211_v31  ;;  %v137_v5 = vshll.u32 %v97_v55, 8 }
  0xae   :  { %vm100_vm0 = vcmp.gt.s32.totalorder %v99_v32, 0 }
  0xaf   :  { %v101_v34 = vsel %vm100_vm0, %v99_v32, 0 }
  0xb0   :  { %v103_v35 = vand.u32 31, %v101_v34  ;;  %v102_v38 = vshrl.u32 %v101_v34, 5 }
  0xb2   :  { %v104_v36 = vsub.s32 32, %v103_v35  ;;  %v106_v40 = vshll.u32 %v313_v39, %v103_v35  ;;  %v109_v42 = vshll.u32 %v314_v41, %v103_v35  ;;  %v112_v46 = vshll.u32 %v315_v44, %v103_v35 }
  0xb3   :  { %v115_v49 = vshll.u32 %v316_v47, %v103_v35  ;;  %v118_v52 = vshll.u32 %v317_v50, %v103_v35  ;;  %vm121_vm1 = vcmp.lt.s32.totalorder %v102_v38, 1  ;;  %vm124_vm2 = vcmp.lt.s32.totalorder %v102_v38, 4 }
  0xb4   :  { %v107_v43 = vshrl.u32 %v314_v41, %v104_v36  ;;  %v110_v45 = vshrl.u32 %v315_v44, %v104_v36  ;;  %v113_v48 = vshrl.u32 %v316_v47, %v104_v36  ;;  %v116_v51 = vshrl.u32 %v317_v50, %v104_v36 }
  0xb5   :  { %v119_v54 = vshrl.u32 %v318_v53, %v104_v36  ;;  %v105_v0 = vshrl.u32 %v313_v39, %v104_v36  ;;  %vm123_vm3 = vcmp.lt.s32.totalorder %v102_v38, 3  ;;  %vm122_vm4 = vcmp.lt.s32.totalorder %v102_v38, 2 }
  0xb6   :  { %v108_v56 = vor.u32 %v107_v43, %v106_v40  ;;  %v111_v57 = vor.u32 %v110_v45, %v109_v42  ;;  %v114_v58 = vor.u32 %v113_v48, %v112_v46  ;;  %v117_v59 = vor.u32 %v116_v51, %v115_v49 }
  0xb7   :  { %v120_v60 = vor.u32 %v119_v54, %v118_v52 }
  0xb8   :  { %v126_v61 = vsel %vm124_vm2, %v114_v58, 2102212464  ;;  %v129_v62 = vsel %vm121_vm1, %v108_v56, %v111_v57  ;;  %v133_v63 = vsel %vm121_vm1, %v111_v57, %v114_v58  ;;  %v130_v1 = vsel %vm124_vm2, %v117_v59, 920167782 }
  0xb9   :  { %v134_v2 = vsel %vm124_vm2, %v120_v60, 1326507024  ;;  %v131_v3 = vsel %vm123_vm3, %v114_v58, %v130_v1  ;;  %v125_v6 = vsel %vm121_vm1, %v105_v0, %v108_v56  ;;  %v127_v7 = vsel %vm123_vm3, %v111_v57, %v126_v61 }
  0xba   :  { %v135_v4 = vsel %vm123_vm3, %v117_v59, %v134_v2  ;;  %v132_v8 = vsel %vm122_vm4, %v129_v62, %v131_v3  ;;  %v128_v14 = vsel %vm122_vm4, %v125_v6, %v127_v7 }
  0xbb   :  { %v136_v9 = vsel %vm122_vm4, %v133_v63, %v135_v4  ;;  %v358_v12 = vmul.u32.u64.low %v137_v5, %v132_v8  ;;  %v359_v13 = vmul.u32.u64.high %v137_v5, %v132_v8, %v358_v12  ;;  %v144_v16 = vmul.u32 %v137_v5, %v128_v14 }
  0xbc   :  { %v355_v10 = vmul.u32.u64.low %v137_v5, %v136_v9  ;;  %v356_v11 = vmul.u32.u64.high %v137_v5, %v136_v9, %v355_v10 }
  0xbd   :  { %v147_v15 = vadd.s32 1, %v359_v13 }
  0xbe   :  { %vm146_vm5 = vc.u32 %v356_v11, %v358_v12  ;;  %v145_v29 = vadd.s32 %v358_v12, %v356_v11 }
  0xbf   :  { %v148_v17 = vsel %vm146_vm5, %v147_v15, %v359_v13 }
  0xc0   :  { %v149_v18 = vadd.s32 %v148_v17, %v144_v16 }
  0xc2   :  { %v150_v19 = vadd.s32 536870912, %v149_v18 }
  0xc4   :  { %v151_v20 = vshrl.u32 %v150_v19, 30 }
  0xc6   :  { %v152_v21 = vshll.u32 %v151_v20, 30  ;;  %v175_v43 = vsub.s32 4, %v151_v20 }
  0xc8   :  { %v153_v22 = vsub.s32 %v149_v18, %v152_v21  ;;  %v176_v46 = vsel %vm91_vm7, %v175_v43, %v151_v20 }
  0xc9   :  { %v178_v47 = vsel %vm90_vm8, 0, %v176_v46 }
  0xca   :  { %v155_v23 = vsub.s32 0, %v153_v22  ;;  %v182_v48 = vadd.s32 3, %v178_v47 }
  0xcc   :  { %v212_v24 = vmin.u32 %v155_v23, %v153_v22  ;;  %v183_v49 = vand.u32 3, %v182_v48 }
  0xce   :  { %v157_v25 = vclz %v212_v24  ;;  %vm188_vm9 = vcmp.eq.s32.totalorder %v183_v49, 2  ;;  %vm185_vm10 = vcmp.eq.s32.totalorder %v183_v49, 0  ;;  %vm184_vm11 = vcmp.lt.s32.totalorder %v183_v49, 2 }
  0xd0   :  { %v213_v26 = vadd.s32 4294967294, %v157_v25 }
  0xd2   :  { %vm214_vm6 = vcmp.lt.s32.totalorder %v213_v26, 0 }
  0xd3   :  { %v160_v27 = vsel %vm214_vm6, 0, %v213_v26 }
  0xd4   :  { %v161_v30 = vsub.s32 32, %v160_v27  ;;  %v165_v31 = vsub.s32 4294967266, %v160_v27  ;;  %v162_v32 = vshll.u32 %v153_v22, %v160_v27 }
  0xd6   :  { %v163_v34 = vshrl.u32 %v145_v29, %v161_v30  ;;  %v166_v35 = vadd.s32 127, %v165_v31 }
  0xd8   :  { %v164_v36 = vor.u32 %v163_v34, %v162_v32  ;;  %v167_v37 = vshll.u32 %v166_v35, 23 }
  0xda   :  { %v168_v38 = vor.u32 4788187, %v167_v37  ;;  %v171_v40 = vcvt.s32.f32 %v164_v36 }
  0xdc   :  { %v169_v39 = vand.u32 2147483647, %v168_v38 }
  0xde   :  { %v172_v41 = vmul.f32 %v171_v40, %v169_v39 }
  0xe0   :  { %v173_v42 = vxor.u32 2147483648, %v172_v41 }
  0xe2   :  { %v174_v44 = vsel %vm91_vm7, %v173_v42, %v172_v41 }
  0xe3   :  { %v177_v45 = vsel %vm90_vm8, %v349_v28, %v174_v44 }
  0xe4   :  { %237 = vcosq.f32 %v177_v45 }
  0xe5   :  { %239 = vsinq.f32 %v177_v45 }
  0xf1   :  { %v238_v50 = vpop.eup %237 }
  0xf2   :  { %v240_v51 = vpop.eup %239  ;;  %v189_v52 = vxor.u32 2147483648, %v238_v50 }
  0xf3   :  { %v186_v53 = vxor.u32 2147483648, %v240_v51 }
  0xf4   :  { %v190_v54 = vsel %vm188_vm9, %v189_v52, %v240_v51 }
  0xf5   :  { %v187_v33 = vsel %vm185_vm10, %v238_v50, %v186_v53 }
  0xf6   :  { %v191_v55 = vsel %vm184_vm11, %v187_v33, %v190_v54 }
  0xf7   :  { %v192_v56 = vsel %vm181_vm12, nan, %v191_v55 }
  0xf8   :  { %193 = vst [vmem:[#allocation7] sm:$0xf] %v192_v56 }
  0xf9   :  { %292 = shalt.err (!%p289_p0)
}
  0xfa   :  { %203 = dma.vmem_to_hbm [thread:$0]  %s201_s22, 64, %s376_s3, [#allocation4]  }
  0xfb   :  { %305 = dma.done.wait [#allocation4], 64  }
  0xfc   :  { %306 = vsyncadd [#allocation4], 4294967232 }
  0xfd   :  { %207 = vsyncpa [#allocation3], 1 }
  0xfe   :  { %208 = vsyncpa [#allocation6], 1 }
  0xff   :  { %209 = vsyncpa [#allocation4], 1 }

</bundles_post_ra>
